<compile_context>
chip_gen: v5e
topology: v5e:2x2
jax: 0.10.0
libtpu: 0.0.40
codegen_flags: <defaults>
</compile_context>

<pallas_src>
import jax
import jax.numpy as jnp
from jax.experimental import pallas as pl
from jax.experimental.pallas import tpu as pltpu


def shape_predictor_kernel(feat_ref, w_ref, b_ref, out_ref):
    # Linear: [tb, nz] @ [nz, tn]  (bf16 inputs, f32 accumulate on MXU) + bias.
    acc = jnp.dot(feat_ref[...], w_ref[...], preferred_element_type=jnp.float32)
    out_ref[...] = (acc + b_ref[...]).astype(out_ref.dtype)


def _pick_tile(full, preferred, align):
    """Largest multiple of `align` <= `preferred` that divides `full`; else full dim.

    Guarantees block_shape is (8,128)-aligned or equal to the full dim, and that
    the grid divides exactly (no ragged edge blocks).
    """
    if full <= preferred or full % align != 0:
        return full
    t = (preferred // align) * align
    while t >= align:
        if full % t == 0:
            return t
        t -= align
    return full


def _select_tiles(B, nz_feat, out_dim, feat_isz, w_isz, b_isz, o_isz):
    total = (B * nz_feat * feat_isz + nz_feat * out_dim * w_isz
             + out_dim * b_isz + B * out_dim * o_isz)
    # Fast path: whole problem (double-buffered) comfortably fits in VMEM.
    if 2 * total <= (8 << 20):
        return B, out_dim
    # Tiled path: large batch tiles; ensure >=2 batch blocks for v7x dual-TC.
    tb = _pick_tile(B, 512, 8)
    if B // tb < 2 and B >= 16 and B % 16 == 0:
        tb = _pick_tile(B, B // 2, 8)
    # Column tiles 256-aligned (MXU width on v6e/v7x); fall back to 128-aligned.
    tn = _pick_tile(out_dim, 2048, 256)
    if tn == out_dim and out_dim > 2048:
        tn = _pick_tile(out_dim, 2048, 128)
    return tb, tn


def shape_predictor(feat, weight_t, bias, num_verts):
    """feat: [B, nz_feat], weight_t: [nz_feat, num_verts*3] (bf16 or f32),
    bias: [1, num_verts*3] (f32).  Returns delta_v: [B, num_verts, 3] (f32)."""
    B, nz_feat = feat.shape
    out_dim = weight_t.shape[1]
    assert out_dim == num_verts * 3

    compute_dtype = weight_t.dtype              # bf16 weights -> bf16 matmul inputs
    feat_c = feat.astype(compute_dtype)
    bias2 = bias.reshape(1, out_dim).astype(jnp.float32)

    feat_isz = jnp.dtype(compute_dtype).itemsize
    w_isz = jnp.dtype(weight_t.dtype).itemsize
    b_isz, o_isz = 4, 4

    tb, tn = _select_tiles(B, nz_feat, out_dim, feat_isz, w_isz, b_isz, o_isz)
    n_col, n_row = out_dim // tn, B // tb
    # Batch axis innermost: weight/bias block index is constant across it, so
    # the weight is DMA'd from HBM exactly once per column block.
    grid = (n_col, n_row)

    # Double-buffered VMEM footprint of all blocks; set the scoped limit
    # explicitly (v5e default 16 MiB, v7x physical 64 MiB).
    footprint = 2 * (tb * nz_feat * feat_isz + nz_feat * tn * w_isz
                     + tn * b_isz + tb * tn * o_isz)
    vmem_limit = int(min(max(2 * footprint, 32 << 20), 60 << 20))

    cost = pl.CostEstimate(
        flops=2 * B * nz_feat * out_dim,
        transcendentals=0,
        bytes_accessed=(n_col * B * nz_feat * feat_isz   # feat re-read per column block
                        + nz_feat * out_dim * w_isz      # weight read once (resident)
                        + out_dim * b_isz
                        + B * out_dim * o_isz),
    )

    out_flat = pl.pallas_call(
        shape_predictor_kernel,
        out_shape=jax.ShapeDtypeStruct((B, out_dim), jnp.float32),
        grid=grid,
        in_specs=[
            pl.BlockSpec((tb, nz_feat), lambda j, i: (i, 0)),   # feat row block
            pl.BlockSpec((nz_feat, tn), lambda j, i: (0, j)),   # weight col block (resident over i)
            pl.BlockSpec((1, tn), lambda j, i: (0, j)),         # bias col block (resident over i)
        ],
        out_specs=pl.BlockSpec((tb, tn), lambda j, i: (i, j)),
        compiler_params=pltpu.CompilerParams(
            dimension_semantics=("parallel", "parallel"),
            vmem_limit_bytes=vmem_limit,
        ),
        cost_estimate=cost,
    )(feat_c, weight_t, bias2)

    # delta_v.view(B, -1, 3): metadata reshape in the wrapper.
    return out_flat.reshape(B, num_verts, 3)


def make_params(key, nz_feat, num_verts, weight_dtype=jnp.bfloat16):
    """Mimics the PyTorch init: weight ~ N(0, 1e-4) (explicit in __init__),
    bias ~ U(-1/sqrt(nz_feat), 1/sqrt(nz_feat)) (nn.Linear default).
    Weight is stored transposed vs PyTorch ([nz_feat, num_verts*3]) and in
    bf16 by default to halve HBM traffic (f32 MXU accumulate in the kernel)."""
    out_dim = num_verts * 3
    k_w, k_b = jax.random.split(key)
    weight_t = (1e-4 * jax.random.normal(k_w, (nz_feat, out_dim), jnp.float32)
                ).astype(weight_dtype)
    bound = 1.0 / (nz_feat ** 0.5)
    bias = jax.random.uniform(k_b, (1, out_dim), jnp.float32,
                              minval=-bound, maxval=bound)
    return weight_t, bias


def _reference(feat, weight_t, bias, num_verts):
    # Uses the same quantized operands the kernel sees (upcast to f32), so the
    # only difference vs the kernel is MXU accumulation order.
    f = feat.astype(weight_t.dtype).astype(jnp.float32)
    w = weight_t.astype(jnp.float32)
    out = f @ w + bias.reshape(1, -1).astype(jnp.float32)
    return out.reshape(feat.shape[0], num_verts, 3)


def _check(B, nz_feat, num_verts, k_feat, k_param):
    feat = jax.random.normal(k_feat, (B, nz_feat), jnp.float32)
    weight_t, bias = make_params(k_param, nz_feat, num_verts)
    out = jax.block_until_ready(shape_predictor(feat, weight_t, bias, num_verts))
    ref = _reference(feat, weight_t, bias, num_verts)
    assert out.shape == (B, num_verts, 3)
    assert jnp.allclose(out, ref, atol=1e-4, rtol=1e-4)


if __name__ == "__main__":
    key = jax.random.PRNGKey(0)
    ks = jax.random.split(key, 6)

    # 1) Small shapes consistent with the module's forward (fast path, grid 1x1).
    _check(B=2, nz_feat=32, num_verts=64, k_feat=ks[0], k_param=ks[1])

    # 2) Realistic ShapePredictor shapes (out_dim = 1926, not a multiple of 128;
    #    still the single-block fast path with full-dim blocks).
    _check(B=4, nz_feat=200, num_verts=642, k_feat=ks[2], k_param=ks[3])

    # 3) Large shapes: exercises the tiled path (grid (2,2), batch innermost,
    #    resident weight column blocks, >=2 batch blocks for v7x).
    _check(B=1024, nz_feat=256, num_verts=1024, k_feat=ks[4], k_param=ks[5])

    print("KERNEL_OK")
</pallas_src>

<mosaic_0001>
module attributes {stable_mosaic.version = 11 : i64} {
  func.func @shape_predictor_kernel(%arg0: i32, %arg1: i32, %arg2: memref<2x32xbf16, #tpu.memory_space<vmem>>, %arg3: memref<32x192xbf16, #tpu.memory_space<vmem>>, %arg4: memref<1x192xf32, #tpu.memory_space<vmem>>, %arg5: memref<2x192xf32, #tpu.memory_space<vmem>>) attributes {dimension_semantics = [#tpu.dimension_semantics<parallel>, #tpu.dimension_semantics<parallel>], iteration_bounds = array<i64: 1, 1>, scalar_prefetch = 0 : i64, scratch_operands = 0 : i64, tpu.core_type = #tpu.core_type<tc>, window_params = [{transform_indices = @transform_0, window_bounds = array<i64: 2, 32>}, {transform_indices = @transform_1, window_bounds = array<i64: 32, 192>}, {transform_indices = @transform_2, window_bounds = array<i64: 1, 192>}, {transform_indices = @transform_3, window_bounds = array<i64: 2, 192>}]} {
    %c0 = arith.constant 0 : index
    %c0_0 = arith.constant 0 : index
    %0 = vector.load %arg2[%c0, %c0_0] : memref<2x32xbf16, #tpu.memory_space<vmem>>, vector<2x32xbf16>
    %c0_1 = arith.constant 0 : index
    %c0_2 = arith.constant 0 : index
    %1 = vector.load %arg3[%c0_1, %c0_2] : memref<32x192xbf16, #tpu.memory_space<vmem>>, vector<32x192xbf16>
    %cst = arith.constant dense<0.000000e+00> : vector<2x192xf32>
    %2 = tpu.matmul %0, %1, %cst {dimension_numbers = #tpu.dot_dimension_numbers<[1], [0], [0], [1], [0, 0, 1, 1], [], []>} : vector<2x32xbf16>, vector<32x192xbf16>, vector<2x192xf32> -> vector<2x192xf32>
    %c0_3 = arith.constant 0 : index
    %c0_4 = arith.constant 0 : index
    %3 = vector.load %arg4[%c0_3, %c0_4] : memref<1x192xf32, #tpu.memory_space<vmem>>, vector<1x192xf32>
    %4 = vector.broadcast %3 : vector<1x192xf32> to vector<2x192xf32>
    %5 = arith.addf %2, %4 : vector<2x192xf32>
    %c0_5 = arith.constant 0 : index
    %c0_6 = arith.constant 0 : index
    %6 = vector.load %arg5[%c0_5, %c0_6] : memref<2x192xf32, #tpu.memory_space<vmem>>, vector<2x192xf32>
    tpu.vector_store %arg5[%c0_5, %c0_6], %5 {strides = array<i32>} : memref<2x192xf32, #tpu.memory_space<vmem>>, vector<2x192xf32>,
    return
  }
  func.func @transform_0(%arg0: i32, %arg1: i32) -> (i32, i32) {
    %c0_i32 = arith.constant 0 : i32
    %c0_i32_0 = arith.constant 0 : i32
    return %arg1, %c0_i32 : i32, i32
  }
  func.func @transform_1(%arg0: i32, %arg1: i32) -> (i32, i32) {
    %c0_i32 = arith.constant 0 : i32
    %c0_i32_0 = arith.constant 0 : i32
    return %c0_i32, %arg0 : i32, i32
  }
  func.func @transform_2(%arg0: i32, %arg1: i32) -> (i32, i32) {
    %c0_i32 = arith.constant 0 : i32
    %c0_i32_0 = arith.constant 0 : i32
    return %c0_i32, %arg0 : i32, i32
  }
  func.func @transform_3(%arg0: i32, %arg1: i32) -> (i32, i32) {
    %c0_i32 = arith.constant 0 : i32
    return %arg1, %arg0 : i32, i32
  }
}

</mosaic_0001>

<bundles_post_ra>
// kernel: tpu_custom_call.1
= control target key start
LH: loop header
LB: loop body
LE: loop exit
PB: predicated region body
PF: predicated region fallthrough
CT: control target
= control target key end

     0   :  { %8 = vsyncpa [#allocation3], 0  ;;  %s315_s0 = inlined_call_operand.hbm [shape: bf16[2,32], index: 0, kind: input, shape index: {}]   ;;  %s316_s1 = inlined_call_operand.hbm [shape: bf16[32,192], index: 1, kind: input, shape index: {}]   ;;  %s317_s2 = inlined_call_operand.hbm [shape: f32[1,192], index: 2, kind: input, shape index: {}]   ;;  %s318_s3 = inlined_call_operand.hbm [shape: f32[2,192], index: 3, kind: output, shape index: {}]  }
   0x1   :  { %9 = vsyncpa [#allocation6], 0  ;;  %s26_s14 = sshll.u32 %s316_s1, 4  ;;  %s27_s14 = int_to_ptr.hbm [resolvable:$true] %s26_s14 }
   0x2   :  { %10 = vsyncpa [#allocation4], 0  ;;  %s277_s15 = smov [#allocation5]   ;;  %s16_s19 = sshll.u32 %s315_s0, 4  ;;  %s17_s19 = int_to_ptr.hbm [resolvable:$true] %s16_s19 }
   0x3   :  { %s28_s16 = sshll.u32 %s277_s15, 4  ;;  %s278_s20 = smov 128   ;;  %s29_s16 = int_to_ptr.vmem [resolvable:$true] %s28_s16 }
   0x4   :  { %s279_s21 = smov 8   ;;  %s280_s22 = smov [#allocation2]  }
   0x5   :  { %34 = dma.hbm_to_vmem [thread:$0]  %s27_s14, 512, %s29_s16, [#allocation6], %s278_s20, %s278_s20, %s279_s21  }
   0x6   :  { %s18_s23 = sshll.u32 %s280_s22, 4  ;;  %s40_s26 = sshll.u32 %s317_s2, 4  ;;  %s19_s23 = int_to_ptr.vmem [resolvable:$true] %s18_s23  ;;  %s41_s26 = int_to_ptr.hbm [resolvable:$true] %s40_s26 }
   0x7   :  { %21 = dma.hbm_to_vmem [thread:$0]  %s17_s19, 16, %s19_s23, [#allocation3]  }
   0x8   :  { %s281_s1 = smov [#allocation7]  }
   0x9   :  { %s42_s27 = sshll.u32 %s281_s1, 4  ;;  %s43_s27 = int_to_ptr.vmem [resolvable:$true] %s42_s27 }
   0xa   :  { %45 = dma.hbm_to_vmem [thread:$0]  %s41_s26, 32, %s43_s27, [#allocation6]  }
   0xb   :  { %271 = dma.done.wait [#allocation3], 16  }
   0xc   :  { %272 = vsyncadd [#allocation3], 4294967280 }
   0xd   :  { %273 = dma.done.wait [#allocation6], 544  }
   0xe   :  { %274 = vsyncadd [#allocation6], 4294966752  ;;  %v157_v0 = vld [vmem:[#allocation5 + $0x10] sm:$0xf]  ;;  %v168_v1 = vld [vmem:[#allocation5 + $0x14] sm:$0xf0] }
   0xf   :  { %v167_v2 = vld [vmem:[#allocation5 + $0x14] sm:$0xf]  ;;  %v158_v3 = vor.u32 %v168_v1, %v157_v0  ;;  %v159_v4 = vld [vmem:[#allocation5 + $0x18] sm:$0xf0]  ;;  %v149_v5 = vld [vmem:[#allocation5] sm:$0xf] }
  0x10   :  { %v166_v6 = vld [vmem:[#allocation5 + $0x4] sm:$0xf0]  ;;  %v162_v7 = vor.u32 %v167_v2, %v159_v4  ;;  %v165_v8 = vld [vmem:[#allocation5 + $0x4] sm:$0xf]  ;;  %v151_v9 = vld [vmem:[#allocation5 + $0x8] sm:$0xf0] }
  0x11   :  { %100 = vmatpush.bf16.msra.mxu0 %v158_v3  ;;  %v150_v10 = vor.u32 %v166_v6, %v149_v5  ;;  %v154_v11 = vor.u32 %v165_v8, %v151_v9  ;;  %v59_v12 = vld [vmem:[#allocation2] sm:$0x1]  ;;  %vm90_vm0 = vcmask 261120   ;;  %v64_v13 = vld [vmem:[#allocation7] sm:$0x3]  ;;  %vm123_vm1 = vcmask 1041408  }
  0x12   :  { %113 = vmatpush.bf16.msra.mxu1 %v162_v7  ;;  %v67_v14 = vperm.slane %v64_v13, 1  ;;  %v66_v15 = vperm.slane %v64_v13, 0  ;;  %vm126_vm2 = vcmask 519170   ;;  %s282_s0 = smov [#allocation8]   ;;  %s136_s30 = sshll.u32 %s318_s3, 4  ;;  %s137_s30 = int_to_ptr.hbm [resolvable:$true] %s136_s30 }
  0x13   :  { %s134_s2 = sshll.u32 %s282_s0, 4  ;;  %vm127_vm3 = vmor %vm126_vm2, %vm123_vm1  ;;  %s135_s2 = int_to_ptr.vmem [resolvable:$true] %s134_s2 }
  0x15   :  { %101 = vmatpush.bf16.msra.mxu0 %v150_v10 }
  0x16   :  { %114 = vmatpush.bf16.msra.mxu1 %v154_v11 }
  0x18   :  { %163 = vmatmul.msk.bf16.vlgmr.msra.gmra.mxu0 %vm90_vm0, %v59_v12 }
  0x19   :  { %164 = vmatmul.msk.bf16.vlgmr.msra.gmra.mxu1 %vm90_vm0, %v59_v12 }
  0x95   :  { %v103_v16 = vpop.f32.mrf.mxu0 }
  0x96   :  { %v116_v17 = vpop.f32.mrf.mxu1  ;;  %v104_v19 = vadd.f32 %v103_v16, %v66_v15 }
  0x97   :  { %v117_v18 = vadd.f32 %v116_v17, %v67_v14 }
  0x99   :  { %v122_v20 = vrot.slane %v117_v18, 6 }
  0x9b   :  { %v124_v21 = vsel %vm123_vm1, %v104_v19, %v122_v20 }
  0x9c   :  { %128 = vst.msk [vmem:[#allocation8] sm:$0xf] %vm127_vm3, %v124_v21 }
  0x9d   :  { %v105_v22 = vpop.f32.mrf.mxu0  ;;  %139 = dma.vmem_to_hbm [thread:$0]  %s135_s2, 64, %s137_s30, [#allocation4]  }
  0x9e   :  { %v118_v23 = vpop.f32.mrf.mxu1 }
  0x9f   :  { %275 = dma.done.wait [#allocation4], 64  }
  0xa0   :  { %276 = vsyncadd [#allocation4], 4294967232 }
  0xa1   :  { %144 = vsyncpa [#allocation3], 1 }
  0xa2   :  { %145 = vsyncpa [#allocation6], 1 }
  0xa3   :  { %146 = vsyncpa [#allocation4], 1 }

</bundles_post_ra>
